<compile_context>
chip_gen: v5e
topology: v5e:2x2
jax: 0.10.0
libtpu: 0.0.40
codegen_flags: <defaults>
</compile_context>

<pallas_src>
import functools

import jax
import jax.numpy as jnp
from jax.experimental import pallas as pl
from jax.experimental.pallas import tpu as pltpu

_MIB = 1024 * 1024


def _round_up(x: int, m: int) -> int:
    return ((x + m - 1) // m) * m


def _vmem_capacity_bytes() -> int:
    """Physical VMEM per TensorCore; conservative fallback if unknown."""
    try:
        return int(pltpu.get_tpu_info().vmem_capacity_bytes)
    except Exception:
        pass
    try:
        kind = jax.devices()[0].device_kind.lower()
    except Exception:
        kind = ""
    if "v7" in kind:
        return 64 * _MIB
    if ("v5" in kind) or ("v6" in kind):
        return 128 * _MIB
    return 64 * _MIB  # unknown: assume the smallest (v7x-like) budget


def _choose_tile(dim: int, cap: int, gran: int, max_waste: float = 0.09) -> int:
    """Largest tile (multiple of `gran`, <= cap) whose padding waste on `dim`
    (already rounded to a multiple of `gran`) stays under `max_waste`."""
    cap = max(gran, (cap // gran) * gran)
    if dim <= cap:
        return dim
    best = gran
    for t in range(gran, cap + 1, gran):
        padded = _round_up(dim, t)
        if padded - dim <= max_waste * dim:
            best = t
    return best


def _mlp_kernel(x_ref, w_ref, b_ref, o_ref, acc_ref, *, cast_bf16: bool):
    # x_ref: [tm, tk], w_ref: [tk, tn] (pre-transposed in the wrapper),
    # b_ref: [1, tn], o_ref: [tm, tn], acc_ref: [tm, tn] f32 scratch.
    k = pl.program_id(2)

    a = x_ref[...]
    w = w_ref[...]
    if cast_bf16:
        a = a.astype(jnp.bfloat16)
        w = w.astype(jnp.bfloat16)
    part = jnp.dot(a, w, preferred_element_type=jnp.float32)

    @pl.when(k == 0)
    def _():
        acc_ref[...] = part           # overwrite: no separate zero-fill store

    @pl.when(k > 0)
    def _():
        acc_ref[...] += part

    @pl.when(k == pl.num_programs(2) - 1)
    def _():
        y = acc_ref[...] + b_ref[...].astype(jnp.float32)
        o_ref[...] = jnp.maximum(y, 0.0).astype(o_ref.dtype)


@functools.partial(jax.jit, static_argnames=("bf16_matmul",))
def mlp_block(x, weight, bias, *, bf16_matmul: bool = False):
    """y = relu(x @ weight.T + bias).

    x: [..., in_channels]; weight: [out, in] (PyTorch nn.Linear layout);
    bias: [out]. bf16_matmul=True feeds the MXU bf16 operands (f32
    accumulation kept) — a fast path with slightly reduced precision.
    """
    in_channels = x.shape[-1]
    out_channels = weight.shape[0]
    lead_shape = x.shape[:-1]
    m = 1
    for d in lead_shape:
        m *= d

    x2d = x.reshape(m, in_channels)
    dtype = x.dtype
    cast_bf16 = bool(bf16_matmul) and dtype == jnp.float32

    # ---- generation-aware tile caps & VMEM limit --------------------------
    vmem_cap = _vmem_capacity_bytes()
    if vmem_cap >= 100 * _MIB:          # v5e / v6e: 128 MiB VMEM
        cap_m, cap_k, cap_n = 1024, 1024, 1024
    else:                               # v7x (64 MiB) / unknown: narrow tm, deep tk
        cap_m, cap_k, cap_n = 512, 1024, 1024
    vmem_limit = int(min((vmem_cap * 3) // 4, 100 * _MIB))

    # ---- tile selection: round to HW granularity only, then pick tiles ----
    sub = 16 if dtype == jnp.dtype(jnp.bfloat16) else 8
    m_r = _round_up(m, sub)
    k_r = _round_up(in_channels, 128)
    n_r = _round_up(out_channels, 128)

    tm = _choose_tile(m_r, cap_m, sub)
    if _round_up(m_r, tm) // tm == 1 and n_r >= 256:
        # Keep >=2 blocks on a parallel axis so both v7x TensorCores get work.
        cap_n = min(cap_n, max(128, ((n_r // 2) // 128) * 128))
    tk = _choose_tile(k_r, cap_k, 128)
    tn = _choose_tile(n_r, cap_n, 128)

    mp = _round_up(m_r, tm)
    kp = _round_up(k_r, tk)
    np_ = _round_up(n_r, tn)

    # ---- minimal zero-padding (no-ops when already aligned) ---------------
    if (mp, kp) != (m, in_channels):
        x2d = jnp.pad(x2d, ((0, mp - m), (0, kp - in_channels)))
    # Pre-transpose weight to [K, N] once here (fusable one-time XLA op).
    wT = weight.T
    if (kp, np_) != (in_channels, out_channels):
        wT = jnp.pad(wT, ((0, kp - in_channels), (0, np_ - out_channels)))
    b2d = bias.reshape(1, out_channels)
    if np_ != out_channels:
        b2d = jnp.pad(b2d, ((0, 0), (0, np_ - out_channels)))

    grid = (mp // tm, np_ // tn, kp // tk)

    # Deeper weight prefetch when the kernel degenerates to pure weight
    # streaming (all of M in one tile) and the weight actually streams.
    if grid[0] == 1 and grid[1] * grid[2] >= 3:
        w_spec = pl.BlockSpec((tk, tn), lambda i, j, k: (k, j),
                              pipeline_mode=pl.Buffered(3))
    else:
        w_spec = pl.BlockSpec((tk, tn), lambda i, j, k: (k, j))

    elem = jnp.dtype(dtype).itemsize
    cost = pl.CostEstimate(
        flops=2 * mp * np_ * kp,
        transcendentals=0,
        bytes_accessed=(mp * kp * elem * grid[1]      # x re-read per j tile
                        + kp * np_ * elem * grid[0]   # w re-read per i tile
                        + np_ * elem                  # bias
                        + mp * np_ * elem),           # output
    )

    out2d = pl.pallas_call(
        functools.partial(_mlp_kernel, cast_bf16=cast_bf16),
        out_shape=jax.ShapeDtypeStruct((mp, np_), dtype),
        grid_spec=pltpu.PrefetchScalarGridSpec(
            num_scalar_prefetch=0,
            grid=grid,
            in_specs=[
                pl.BlockSpec((tm, tk), lambda i, j, k: (i, k)),   # activations
                w_spec,                                           # weight [K, N]
                pl.BlockSpec((1, tn), lambda i, j, k: (0, j)),    # bias
            ],
            out_specs=pl.BlockSpec((tm, tn), lambda i, j, k: (i, j)),
            scratch_shapes=[pltpu.VMEM((tm, tn), jnp.float32)],
        ),
        compiler_params=pltpu.CompilerParams(
            dimension_semantics=("parallel", "parallel", "arbitrary"),
            vmem_limit_bytes=vmem_limit,
        ),
        cost_estimate=cost,
    )(x2d, wT, b2d)

    out2d = out2d[:m, :out_channels]
    return out2d.reshape(*lead_shape, out_channels)


if __name__ == "__main__":
    key = jax.random.PRNGKey(0)
    k_x, k_w, k_b = jax.random.split(key, 3)

    batch, seq = 2, 8
    in_channels, out_channels = 32, 64

    # Deterministic params matching nn.Linear's uniform(-1/sqrt(K), 1/sqrt(K)).
    bound = 1.0 / (in_channels ** 0.5)
    weight = jax.random.uniform(
        k_w, (out_channels, in_channels), jnp.float32, -bound, bound)
    bias = jax.random.uniform(k_b, (out_channels,), jnp.float32, -bound, bound)
    x = jax.random.normal(k_x, (batch, seq, in_channels), jnp.float32)

    ref = jnp.maximum(x @ weight.T + bias, 0.0)

    # Exact-semantics (f32 MXU) path.
    out = mlp_block(x, weight, bias)
    jax.block_until_ready(out)
    assert out.shape == (batch, seq, out_channels)
    assert jnp.allclose(out, ref, atol=1e-5, rtol=1e-5)

    # bf16 fast path (f32 accumulation), looser tolerance.
    out_bf16 = mlp_block(x, weight, bias, bf16_matmul=True)
    jax.block_until_ready(out_bf16)
    assert jnp.allclose(out_bf16, ref, atol=5e-2, rtol=5e-2)

    print("KERNEL_OK")
</pallas_src>

<mosaic_0001>
module attributes {stable_mosaic.version = 11 : i64} {
  func.func @_mlp_kernel(%arg0: i32, %arg1: i32, %arg2: i32, %arg3: memref<16x128xf32, #tpu.memory_space<vmem>>, %arg4: memref<128x128xf32, #tpu.memory_space<vmem>>, %arg5: memref<1x128xf32, #tpu.memory_space<vmem>>, %arg6: memref<16x128xf32, #tpu.memory_space<vmem>>, %arg7: memref<16x128xf32, #tpu.memory_space<vmem>>) attributes {dimension_semantics = [#tpu.dimension_semantics<parallel>, #tpu.dimension_semantics<parallel>, #tpu.dimension_semantics<arbitrary>], iteration_bounds = array<i64: 1, 1, 1>, scalar_prefetch = 0 : i64, scratch_operands = 1 : i64, tpu.core_type = #tpu.core_type<tc>, window_params = [{transform_indices = @transform_0, window_bounds = array<i64: 16, 128>}, {transform_indices = @transform_1, window_bounds = array<i64: 128, 128>}, {transform_indices = @transform_2, window_bounds = array<i64: 1, 128>}, {transform_indices = @transform_3, window_bounds = array<i64: 16, 128>}]} {
    %c0 = arith.constant 0 : index
    %c0_0 = arith.constant 0 : index
    %0 = vector.load %arg3[%c0, %c0_0] : memref<16x128xf32, #tpu.memory_space<vmem>>, vector<16x128xf32>
    %c0_1 = arith.constant 0 : index
    %c0_2 = arith.constant 0 : index
    %1 = vector.load %arg4[%c0_1, %c0_2] : memref<128x128xf32, #tpu.memory_space<vmem>>, vector<128x128xf32>
    %cst = arith.constant dense<0.000000e+00> : vector<16x128xf32>
    %2 = tpu.matmul %0, %1, %cst {dimension_numbers = #tpu.dot_dimension_numbers<[1], [0], [0], [1], [0, 0, 1, 1], [], []>} : vector<16x128xf32>, vector<128x128xf32>, vector<16x128xf32> -> vector<16x128xf32>
    %c0_i32 = arith.constant 0 : i32
    %3 = arith.cmpi eq, %arg2, %c0_i32 : i32
    %4 = arith.extui %3 : i1 to i32
    %c0_i32_3 = arith.constant 0 : i32
    %5 = arith.cmpi ne, %4, %c0_i32_3 : i32
    scf.if %5 {
      %c0_8 = arith.constant 0 : index
      %c0_9 = arith.constant 0 : index
      %12 = vector.load %arg7[%c0_8, %c0_9] : memref<16x128xf32, #tpu.memory_space<vmem>>, vector<16x128xf32>
      tpu.vector_store %arg7[%c0_8, %c0_9], %2 {strides = array<i32>} : memref<16x128xf32, #tpu.memory_space<vmem>>, vector<16x128xf32>,
    } else {
    }
    %c0_i32_4 = arith.constant 0 : i32
    %6 = arith.cmpi sgt, %arg2, %c0_i32_4 : i32
    %7 = arith.extui %6 : i1 to i32
    %c0_i32_5 = arith.constant 0 : i32
    %8 = arith.cmpi ne, %7, %c0_i32_5 : i32
    scf.if %8 {
      %c0_8 = arith.constant 0 : index
      %c0_9 = arith.constant 0 : index
      %12 = vector.load %arg7[%c0_8, %c0_9] : memref<16x128xf32, #tpu.memory_space<vmem>>, vector<16x128xf32>
      %13 = arith.addf %12, %2 : vector<16x128xf32>
      %c0_10 = arith.constant 0 : index
      %c0_11 = arith.constant 0 : index
      %14 = vector.load %arg7[%c0_10, %c0_11] : memref<16x128xf32, #tpu.memory_space<vmem>>, vector<16x128xf32>
      tpu.vector_store %arg7[%c0_10, %c0_11], %13 {strides = array<i32>} : memref<16x128xf32, #tpu.memory_space<vmem>>, vector<16x128xf32>,
    } else {
    }
    %c0_i32_6 = arith.constant 0 : i32
    %9 = arith.cmpi eq, %arg2, %c0_i32_6 : i32
    %10 = arith.extui %9 : i1 to i32
    %c0_i32_7 = arith.constant 0 : i32
    %11 = arith.cmpi ne, %10, %c0_i32_7 : i32
    scf.if %11 {
      %c0_8 = arith.constant 0 : index
      %c0_9 = arith.constant 0 : index
      %12 = vector.load %arg7[%c0_8, %c0_9] : memref<16x128xf32, #tpu.memory_space<vmem>>, vector<16x128xf32>
      %c0_10 = arith.constant 0 : index
      %c0_11 = arith.constant 0 : index
      %13 = vector.load %arg5[%c0_10, %c0_11] : memref<1x128xf32, #tpu.memory_space<vmem>>, vector<1x128xf32>
      %14 = vector.broadcast %13 : vector<1x128xf32> to vector<16x128xf32>
      %15 = arith.addf %12, %14 : vector<16x128xf32>
      %cst_12 = arith.constant 0.000000e+00 : f32
      %16 = vector.broadcast %cst_12 : f32 to vector<16x128xf32>
      %17 = arith.maximumf %15, %16 : vector<16x128xf32>
      %c0_13 = arith.constant 0 : index
      %c0_14 = arith.constant 0 : index
      %18 = vector.load %arg6[%c0_13, %c0_14] : memref<16x128xf32, #tpu.memory_space<vmem>>, vector<16x128xf32>
      tpu.vector_store %arg6[%c0_13, %c0_14], %17 {strides = array<i32>} : memref<16x128xf32, #tpu.memory_space<vmem>>, vector<16x128xf32>,
    } else {
    }
    return
  }
  func.func @transform_0(%arg0: i32, %arg1: i32, %arg2: i32) -> (i32, i32) {
    %c0_i32 = arith.constant 0 : i32
    return %arg0, %arg2 : i32, i32
  }
  func.func @transform_1(%arg0: i32, %arg1: i32, %arg2: i32) -> (i32, i32) {
    %c0_i32 = arith.constant 0 : i32
    return %arg2, %arg1 : i32, i32
  }
  func.func @transform_2(%arg0: i32, %arg1: i32, %arg2: i32) -> (i32, i32) {
    %c0_i32 = arith.constant 0 : i32
    %c0_i32_0 = arith.constant 0 : i32
    return %c0_i32, %arg1 : i32, i32
  }
  func.func @transform_3(%arg0: i32, %arg1: i32, %arg2: i32) -> (i32, i32) {
    %c0_i32 = arith.constant 0 : i32
    return %arg0, %arg1 : i32, i32
  }
}

</mosaic_0001>

<bundles_post_ra>
// kernel: mlp_block.1
= control target key start
LH: loop header
LB: loop body
LE: loop exit
PB: predicated region body
PF: predicated region fallthrough
CT: control target
= control target key end

     0   :  { %s190_s1 = inlined_call_operand.vmem [shape: f32[128,128], index: 1, kind: input, shape index: {}]   ;;  %s191_s2 = inlined_call_operand.vmem [shape: f32[1,128], index: 2, kind: input, shape index: {}]   ;;  %s192_s0 = inlined_call_operand.vmem [shape: f32[16,128], index: 0, kind: input, shape index: {}]   ;;  %s193_s3 = inlined_call_operand.vmem [shape: f32[16,128], index: 3, kind: output, shape index: {}]  }
   0x1   :  { %v31_v0 = vld [vmem:[%s190_s1 + $0x78] sm:$0xff]  ;;  %v30_v1 = vld [vmem:[%s190_s1 + $0x70] sm:$0xff]  ;;  %v29_v2 = vld [vmem:[%s190_s1 + $0x68] sm:$0xff] }
   0x2   :  { %32 = vmatpush.msra.mxu0 %v31_v0  ;;  %90 = vmatpush.msra.mxu1 %v31_v0  ;;  %v28_v3 = vld [vmem:[%s190_s1 + $0x60] sm:$0xff]  ;;  %v27_v4 = vld [vmem:[%s190_s1 + $0x58] sm:$0xff]  ;;  %v26_v5 = vld [vmem:[%s190_s1 + $0x50] sm:$0xff] }
   0x3   :  { %v25_v6 = vld [vmem:[%s190_s1 + $0x48] sm:$0xff]  ;;  %v24_v7 = vld [vmem:[%s190_s1 + $0x40] sm:$0xff]  ;;  %v23_v8 = vld [vmem:[%s190_s1 + $0x38] sm:$0xff] }
   0x4   :  { %33 = vmatpush.msra.mxu0 %v30_v1  ;;  %91 = vmatpush.msra.mxu1 %v30_v1  ;;  %v22_v9 = vld [vmem:[%s190_s1 + $0x30] sm:$0xff]  ;;  %v21_v10 = vld [vmem:[%s190_s1 + $0x28] sm:$0xff]  ;;  %v20_v11 = vld [vmem:[%s190_s1 + $0x20] sm:$0xff] }
   0x5   :  { %v19_v12 = vld [vmem:[%s190_s1 + $0x18] sm:$0xff]  ;;  %v18_v13 = vld [vmem:[%s190_s1 + $0x10] sm:$0xff]  ;;  %v17_v14 = vld [vmem:[%s190_s1 + $0x8] sm:$0xff] }
   0x6   :  { %34 = vmatpush.msra.mxu0 %v29_v2  ;;  %92 = vmatpush.msra.mxu1 %v29_v2  ;;  %v16_v15 = vld [vmem:[%s190_s1] sm:$0xff]  ;;  %v15_v17 = vld [vmem:[%s192_s0 + $0x8] sm:$0xff] }
   0x7   :  { %v14_v16 = vld [vmem:[%s192_s0] sm:$0xff] }
   0x8   :  { %35 = vmatpush.msra.mxu0 %v28_v3  ;;  %93 = vmatpush.msra.mxu1 %v28_v3  ;;  %v106_v18 = vld [vmem:[%s191_s2] ss:$0 sm:$0xff] }
   0xa   :  { %36 = vmatpush.msra.mxu0 %v27_v4  ;;  %94 = vmatpush.msra.mxu1 %v27_v4 }
   0xc   :  { %37 = vmatpush.msra.mxu0 %v26_v5  ;;  %95 = vmatpush.msra.mxu1 %v26_v5 }
   0xe   :  { %38 = vmatpush.msra.mxu0 %v25_v6  ;;  %96 = vmatpush.msra.mxu1 %v25_v6 }
  0x10   :  { %39 = vmatpush.msra.mxu0 %v24_v7  ;;  %97 = vmatpush.msra.mxu1 %v24_v7 }
  0x12   :  { %40 = vmatpush.msra.mxu0 %v23_v8  ;;  %98 = vmatpush.msra.mxu1 %v23_v8 }
  0x14   :  { %41 = vmatpush.msra.mxu0 %v22_v9  ;;  %99 = vmatpush.msra.mxu1 %v22_v9 }
  0x16   :  { %42 = vmatpush.msra.mxu0 %v21_v10  ;;  %100 = vmatpush.msra.mxu1 %v21_v10 }
  0x18   :  { %43 = vmatpush.msra.mxu0 %v20_v11  ;;  %101 = vmatpush.msra.mxu1 %v20_v11 }
  0x1a   :  { %44 = vmatpush.msra.mxu0 %v19_v12  ;;  %102 = vmatpush.msra.mxu1 %v19_v12 }
  0x1c   :  { %45 = vmatpush.msra.mxu0 %v18_v13  ;;  %103 = vmatpush.msra.mxu1 %v18_v13 }
  0x1e   :  { %46 = vmatpush.msra.mxu0 %v17_v14  ;;  %104 = vmatpush.msra.mxu1 %v17_v14 }
  0x20   :  { %47 = vmatpush.msra.mxu0 %v16_v15  ;;  %105 = vmatpush.msra.mxu1 %v16_v15 }
  0x21   :  { %48 = vmatmul.f32.vlgmr.msra.gmra.mxu0 %v14_v16  ;;  %51 = vmatmul.f32.vlgmr.msra.gmra.mxu1 %v15_v17 }
  0x9e   :  { %v49_v19 = vpop.f32.mrf.mxu0  ;;  %v52_v20 = vpop.f32.mrf.mxu1 }
  0x9f   :  { %v80_v21 = vadd.f32 %v106_v18, %v49_v19  ;;  %v81_v22 = vadd.f32 %v106_v18, %v52_v20 }
  0xa1   :  { %v82_v23 = vmax.f32 %v80_v21, 0.0  ;;  %v83_v24 = vmax.f32 %v81_v22, 0.0 }
  0xa3   :  { %84 = vst [vmem:[%s193_s3] sm:$0xff] %v82_v23 }
  0xa4   :  { %85 = vst [vmem:[%s193_s3 + $0x8] sm:$0xff] %v83_v24 }

</bundles_post_ra>
